<compile_context>
chip_gen: v5e
topology: v5e:2x2
jax: 0.10.0
libtpu: 0.0.40
codegen_flags: <defaults>
</compile_context>

<pallas_src>
import functools
import math

import jax
import jax.numpy as jnp
from jax.experimental import pallas as pl
from jax.experimental.pallas import tpu as pltpu

_C1 = math.sqrt(2.0 / math.pi)      # sqrt(2/pi)
_C2 = 0.044715 * _C1                # folded constant: 0.044715*sqrt(2/pi)


def _gelu_kernel(x_ref, o_ref, *, compute_dtype):
    x = x_ref[...].astype(compute_dtype)
    # x * (C1 + C2*x*x) == C1*x + C2*x^3 with one fewer multiply (no f32 FMA
    # on the VPU).  tanh goes to the EUP slot, which is otherwise idle here.
    inner = x * (_C1 + _C2 * (x * x))
    y = 0.8 * x * (1.0 + jnp.tanh(inner))
    o_ref[...] = y.astype(o_ref.dtype)


def _round_down(a, b):
    return (a // b) * b


def _round_up(a, b):
    return -(-a // b) * b


def _tpu_vmem_capacity_bytes():
    """Best-effort physical VMEM size per core; None if undeterminable."""
    try:
        info = pltpu.get_tpu_info()
    except Exception:
        return None
    for attr in ("vmem_capacity_bytes", "vmem_size_bytes", "vmem_bytes"):
        val = getattr(info, attr, None)
        if val:
            return int(val)
    return None


def gelu_pallas(x, *, target_block_bytes=None, vmem_limit_bytes=None):
    """Applies the module's GELU elementwise. Works for any shape/float dtype."""
    orig_shape = x.shape
    n = int(x.size)
    if n == 0:
        return x

    dtype = x.dtype
    itemsize = jnp.dtype(dtype).itemsize
    # Packed sublane height: 8 rows for 32-bit, 16 for 16-bit, 32 for 8-bit.
    sublane = max(8, 32 // itemsize)

    # Generation-aware defaults (v7x: 64 MiB VMEM/TC; v5e/v6e: 128 MiB).
    vmem_cap = _tpu_vmem_capacity_bytes()
    small_vmem = vmem_cap is not None and vmem_cap <= 64 * 1024 * 1024   # v7x-class
    big_vmem = vmem_cap is not None and vmem_cap > 96 * 1024 * 1024      # v5e/v6e
    if target_block_bytes is None:
        target_block_bytes = (8 if big_vmem else 4) * 1024 * 1024
    if vmem_limit_bytes is None:
        vmem_limit_bytes = (64 if big_vmem else 32) * 1024 * 1024

    # bf16-native compute on bf16 inputs; f32 compute otherwise.
    compute_dtype = jnp.bfloat16 if dtype == jnp.bfloat16 else jnp.float32
    kernel = functools.partial(_gelu_kernel, compute_dtype=compute_dtype)
    cparams = pltpu.CompilerParams(
        dimension_semantics=("parallel",),
        vmem_limit_bytes=vmem_limit_bytes,
    )

    x_flat = x.reshape(-1)  # contiguous reshape: metadata only, no HBM pass

    # ---- Fast path: total size is a multiple of 128 -> lane-dense repack ----
    W = next((w for w in (512, 256, 128) if n % w == 0), None)
    if W is not None:
        rows = n // W
        budget_rows = max(
            sublane, _round_down(target_block_bytes // (W * itemsize), sublane))
        if budget_rows >= rows:
            tile_rows = rows  # whole array fits in one block (full-dim block ok)
            # v7x only: give the second TensorCore work by splitting a
            # single-block workload into 2 grid steps (masked partial second
            # block; no padded copies).
            if small_vmem and rows >= 2 * sublane:
                tile_rows = _round_up(-(-rows // 2), sublane)
        else:
            tile_rows = budget_rows  # multiple of `sublane`
        grid = (pl.cdiv(rows, tile_rows),)  # last block may be partial (masked)

        out2d = pl.pallas_call(
            kernel,
            out_shape=jax.ShapeDtypeStruct((rows, W), dtype),
            grid_spec=pltpu.PrefetchScalarGridSpec(
                num_scalar_prefetch=0,
                grid=grid,
                in_specs=[pl.BlockSpec((tile_rows, W), lambda i: (i, 0))],
                out_specs=pl.BlockSpec((tile_rows, W), lambda i: (i, 0)),
            ),
            compiler_params=cparams,
        )(x_flat.reshape(rows, W))
        return out2d.reshape(orig_shape)

    # ---- Ragged path: 1-D flat view, last grid block partial/masked --------
    # No pad / slice: Pallas clips the tail block's writeback to n elements.
    blk = max(8 * 128, _round_down(target_block_bytes // itemsize, 8 * 128))
    if blk >= n:
        blk = n  # single block == full array dim (always a legal block shape)
    grid = (pl.cdiv(n, blk),)

    out = pl.pallas_call(
        kernel,
        out_shape=jax.ShapeDtypeStruct((n,), dtype),
        grid_spec=pltpu.PrefetchScalarGridSpec(
            num_scalar_prefetch=0,
            grid=grid,
            in_specs=[pl.BlockSpec((blk,), lambda i: (i,))],
            out_specs=pl.BlockSpec((blk,), lambda i: (i,)),
        ),
        compiler_params=cparams,
    )(x_flat)
    return out.reshape(orig_shape)


def gelu_ref(x):
    """Pure-JAX reference matching the PyTorch module (0.8 coefficient)."""
    xf = x.astype(jnp.float32)
    c = jnp.float32(math.sqrt(2.0 / math.pi))
    y = 0.8 * xf * (1.0 + jnp.tanh(c * (xf + 0.044715 * jnp.power(xf, 3))))
    return y.astype(x.dtype)


if __name__ == "__main__":
    # 1) Module-consistent small activation shape: (batch=2, seq=8, hidden=32).
    x = jax.random.normal(jax.random.PRNGKey(0), (2, 8, 32), dtype=jnp.float32)
    out = gelu_pallas(x)
    jax.block_until_ready(out)
    assert out.shape == x.shape and out.dtype == x.dtype
    assert jnp.allclose(out, gelu_ref(x), atol=1e-5, rtol=1e-5)

    # 2) Ragged total size (not a multiple of 128): 1-D path, no pad / slice.
    x2 = jax.random.normal(jax.random.PRNGKey(1), (4, 33, 200), dtype=jnp.float32)
    out2 = gelu_pallas(x2)
    jax.block_until_ready(out2)
    assert jnp.allclose(out2, gelu_ref(x2), atol=1e-5, rtol=1e-5)

    # 3) Multi-step grid with a masked partial last block (tiny block budget).
    x3 = jax.random.normal(jax.random.PRNGKey(2), (2, 40, 512), dtype=jnp.float32)
    out3 = gelu_pallas(x3, target_block_bytes=64 * 1024)
    jax.block_until_ready(out3)
    assert jnp.allclose(out3, gelu_ref(x3), atol=1e-5, rtol=1e-5)

    # 4) bf16 input -> native bf16 compute path.
    x4 = jax.random.normal(jax.random.PRNGKey(3), (2, 8, 64), dtype=jnp.bfloat16)
    out4 = gelu_pallas(x4)
    jax.block_until_ready(out4)
    assert out4.shape == x4.shape and out4.dtype == jnp.bfloat16
    assert jnp.allclose(out4.astype(jnp.float32), gelu_ref(x4).astype(jnp.float32),
                        atol=5e-2, rtol=5e-2)

    print("KERNEL_OK")
</pallas_src>

<mosaic_0001>
module attributes {stable_mosaic.version = 11 : i64} {
  func.func @_gelu_kernel(%arg0: i32, %arg1: memref<1x512xf32, #tpu.memory_space<vmem>>, %arg2: memref<1x512xf32, #tpu.memory_space<vmem>>) attributes {dimension_semantics = [#tpu.dimension_semantics<parallel>], iteration_bounds = array<i64: 1>, scalar_prefetch = 0 : i64, scratch_operands = 0 : i64, tpu.core_type = #tpu.core_type<tc>, window_params = [{transform_indices = @transform_0, window_bounds = array<i64: 1, 512>}, {transform_indices = @transform_1, window_bounds = array<i64: 1, 512>}]} {
    %c0 = arith.constant 0 : index
    %c0_0 = arith.constant 0 : index
    %0 = vector.load %arg1[%c0, %c0_0] : memref<1x512xf32, #tpu.memory_space<vmem>>, vector<1x512xf32>
    %1 = arith.mulf %0, %0 : vector<1x512xf32>
    %cst = arith.constant 0.0356774069 : f32
    %2 = vector.broadcast %cst : f32 to vector<1x512xf32>
    %3 = arith.mulf %2, %1 : vector<1x512xf32>
    %cst_1 = arith.constant 0.797884583 : f32
    %4 = vector.broadcast %cst_1 : f32 to vector<1x512xf32>
    %5 = arith.addf %4, %3 : vector<1x512xf32>
    %6 = arith.mulf %0, %5 : vector<1x512xf32>
    %cst_2 = arith.constant 8.000000e-01 : f32
    %7 = vector.broadcast %cst_2 : f32 to vector<1x512xf32>
    %8 = arith.mulf %7, %0 : vector<1x512xf32>
    %9 = math.tanh %6 : vector<1x512xf32>
    %cst_3 = arith.constant 1.000000e+00 : f32
    %10 = vector.broadcast %cst_3 : f32 to vector<1x512xf32>
    %11 = arith.addf %10, %9 : vector<1x512xf32>
    %12 = arith.mulf %8, %11 : vector<1x512xf32>
    %c0_4 = arith.constant 0 : index
    %c0_5 = arith.constant 0 : index
    %13 = vector.load %arg2[%c0_4, %c0_5] : memref<1x512xf32, #tpu.memory_space<vmem>>, vector<1x512xf32>
    tpu.vector_store %arg2[%c0_4, %c0_5], %12 {strides = array<i32>} : memref<1x512xf32, #tpu.memory_space<vmem>>, vector<1x512xf32>,
    return
  }
  func.func @transform_0(%arg0: i32) -> (i32, i32) {
    %c0_i32 = arith.constant 0 : i32
    %c0_i32_0 = arith.constant 0 : i32
    return %arg0, %c0_i32 : i32, i32
  }
  func.func @transform_1(%arg0: i32) -> (i32, i32) {
    %c0_i32 = arith.constant 0 : i32
    %c0_i32_0 = arith.constant 0 : i32
    return %arg0, %c0_i32 : i32, i32
  }
}

</mosaic_0001>

<bundles_post_ra>
// kernel: tpu_custom_call.1
= control target key start
LH: loop header
LB: loop body
LE: loop exit
PB: predicated region body
PF: predicated region fallthrough
CT: control target
= control target key end

     0   :  { %6 = vsyncpa [#allocation3], 0  ;;  %s128_s0 = inlined_call_operand.hbm [shape: f32[1,512], index: 0, kind: input, shape index: {}]   ;;  %s129_s1 = inlined_call_operand.hbm [shape: f32[1,512], index: 1, kind: output, shape index: {}]  }
   0x1   :  { %7 = vsyncpa [#allocation4], 0  ;;  %s13_s8 = sshll.u32 %s128_s0, 4  ;;  %s110_s9 = smov [#allocation2]   ;;  %s14_s8 = int_to_ptr.hbm [resolvable:$true] %s13_s8 }
   0x2   :  { %s15_s10 = sshll.u32 %s110_s9, 4  ;;  %s16_s10 = int_to_ptr.vmem [resolvable:$true] %s15_s10 }
   0x3   :  { %18 = dma.hbm_to_vmem [thread:$0]  %s14_s8, 64, %s16_s10, [#allocation3]  }
   0x4   :  { %106 = dma.done.wait [#allocation3], 64  }
   0x5   :  { %107 = vsyncadd [#allocation3], 4294967232  ;;  %v23_v0 = vld [vmem:[#allocation2] sm:$0xf]  ;;  %v32_v5 = vlaneseq  ;;  %s111_s11 = smov [#allocation5]   ;;  %s44_s14 = sshll.u32 %s129_s1, 4  ;;  %s45_s14 = int_to_ptr.hbm [resolvable:$true] %s44_s14 }
   0x6   :  { %v24_v1 = vmul.f32 %v23_v0, %v23_v0  ;;  %v28_v6 = vmul.f32 0.8, %v23_v0  ;;  %s42_s12 = sshll.u32 %s111_s11, 4  ;;  %s43_s12 = int_to_ptr.vmem [resolvable:$true] %s42_s12 }
   0x7   :  { %vm34_vm0 = vcmp.lt.s32.totalorder %v32_v5, 512 }
   0x8   :  { %v25_v2 = vmul.f32 0.035677407, %v24_v1 }
   0xa   :  { %v26_v3 = vadd.f32 0.7978846, %v25_v2 }
   0xc   :  { %v27_v4 = vmul.f32 %v26_v3, %v23_v0 }
   0xe   :  { %56 = vtanh.f32 %v27_v4 }
  0x14   :  { %v57_v7 = vpop.eup %56 }
  0x15   :  { %v30_v8 = vadd.f32 1.0, %v57_v7 }
  0x17   :  { %v31_v9 = vmul.f32 %v30_v8, %v28_v6 }
  0x19   :  { %36 = vst.msk [vmem:[#allocation5] sm:$0xf] %vm34_vm0, %v31_v9 }
  0x1a   :  { %47 = dma.vmem_to_hbm [thread:$0]  %s43_s12, 64, %s45_s14, [#allocation4]  }
  0x1b   :  { %108 = dma.done.wait [#allocation4], 64  }
  0x1c   :  { %109 = vsyncadd [#allocation4], 4294967232 }
  0x1d   :  { %52 = vsyncpa [#allocation3], 1 }
  0x1e   :  { %53 = vsyncpa [#allocation4], 1 }

</bundles_post_ra>
